<compile_context>
chip_gen: v5e
topology: v5e:2x2
jax: 0.10.0
libtpu: 0.0.40
codegen_flags: <defaults>
</compile_context>

<pallas_src>
import jax
import jax.numpy as jnp
from jax.experimental import pallas as pl
from jax.experimental.pallas import tpu as pltpu

N_SAMPLES = 100   # the "for times in range(100)" loop in forward()
D_X = 3
H = 20
HP = 24           # hidden dim padded to a multiple of 8 sublanes
LANE = 128        # samples live on the lane axis (n <= 128)

# Combined VMEM slab row layout (every block starts at a multiple of 8).
ROW_WZ = 0                   # [  0, 24)  W_enc1[zr_col, :]          (static)
ROW_C = ROW_WZ + HP          # [ 24, 48)  const part of encoder pre  (per call)
ROW_WE2 = ROW_C + HP         # [ 48, 72)  W_enc2[:, 0]               (static)
ROW_HW1 = ROW_WE2 + HP       # [ 72,144)  fused head w1 (x/second/nonlear)
ROW_HB1 = ROW_HW1 + 3 * HP   # [144,216)  fused head b1
ROW_HW2 = ROW_HB1 + 3 * HP   # [216,288)  fused head w2
ROW_ZR = ROW_HW2 + 3 * HP    # [288,289)  zr samples                 (per call)
SLAB_ROWS = 296              # padded to a multiple of 8

# SMEM scalar block layout.
(_SX0, _SX1, _SX2, _SA, _SB, _SLOGA, _SBE2,
 _SB2X, _SB2S, _SB2N, _SINVN, _SNF) = range(12)


def linearnet_kernel(slab_ref, scal_ref, out_ref):
    """Transposed (feature, lane=sample) layout; VPU/XLU/EUP only, no MXU."""
    w_z = slab_ref[ROW_WZ:ROW_WZ + HP, :]          # (24,128) lane-dense
    c = slab_ref[ROW_C:ROW_C + HP, :]              # (24,128)
    w_e2 = slab_ref[ROW_WE2:ROW_WE2 + HP, :]       # (24,128)
    hw1 = slab_ref[ROW_HW1:ROW_HW1 + 3 * HP, :]    # (72,128) fused head w1
    hb1 = slab_ref[ROW_HB1:ROW_HB1 + 3 * HP, :]    # (72,128) fused head b1
    hw2 = slab_ref[ROW_HW2:ROW_HW2 + 3 * HP, :]    # (72,128) fused head w2
    zr = slab_ref[ROW_ZR:ROW_ZR + 1, :]            # (1,128)  zr per sample

    x0 = scal_ref[_SX0]
    x1 = scal_ref[_SX1]
    x2 = scal_ref[_SX2]
    a = scal_ref[_SA]
    b = scal_ref[_SB]
    neg_half_log_neg_a = scal_ref[_SLOGA]          # -log(-a)/2, hoisted scalar
    b_e2 = scal_ref[_SBE2]
    b2x = scal_ref[_SB2X]
    b2s = scal_ref[_SB2S]
    b2n = scal_ref[_SB2N]
    inv_n = scal_ref[_SINVN]
    n_f = scal_ref[_SNF]

    # encoder1: pre = zr*W[zr_col] + (u0*W[u0_col] + x@W[x_cols] + b)  -- VPU.
    zr_b = jnp.broadcast_to(zr, (HP, LANE))                  # sublane broadcast
    pre = w_z * zr_b + c                                     # (24,128)
    h = jnp.maximum(pre, 0.0)
    e = jnp.sum(h * w_e2, axis=0, keepdims=True) + b_e2      # (1,128)

    # Analytic d(encoder1)/d(zr): sum_j relu'(pre_j) * W1[zr,j] * W2[j,0].
    grad = jnp.sum(jnp.where(pre > 0.0, w_z * w_e2, 0.0),
                   axis=0, keepdims=True)                    # (1,128)

    # Three 1->20(ReLU)->1 heads fused into a single (72,128) pass.
    e_b = jnp.broadcast_to(e, (3 * HP, LANE))                # sublane broadcast
    hid = jnp.maximum(hw1 * e_b + hb1, 0.0)                  # (72,128) VPU
    prod = hid * hw2
    l2a = jnp.sum(prod[0 * HP:1 * HP, :], axis=0, keepdims=True) + b2x
    l2b = jnp.sum(prod[1 * HP:2 * HP, :], axis=0, keepdims=True) + b2s
    l2c = jnp.sum(prod[2 * HP:3 * HP, :], axis=0, keepdims=True) + b2n

    # torch.norm(cat([l2, l_second, nonli], 1) - x, p=2), per sample.
    norm = jnp.sqrt((l2a - x0) ** 2 + (l2b - x1) ** 2 + (l2c - x2) ** 2)

    loss21 = -(e - b) ** 2 * a + neg_half_log_neg_a + norm * 20000.0
    loss_i = loss21 - jnp.log(jnp.abs(grad))       # log(1/|g|) == -log|g|

    # Drop padded lanes (mask built in-kernel; select is robust to inf).
    lane = jax.lax.broadcasted_iota(jnp.int32, (1, LANE), 1).astype(jnp.float32)
    loss_i = jnp.where(lane < n_f, loss_i, 0.0)

    total = jnp.sum(loss_i) * inv_n
    out_ref[0:1, :] = e                                      # lane-dense store
    out_ref[1:2, :] = jnp.full((1, LANE), total, jnp.float32)


def _col_block(col):
    """(20,) vector -> (24,128) lane-replicated, sublane-zero-padded block."""
    col = jnp.pad(col.astype(jnp.float32), (0, HP - H))
    return jnp.broadcast_to(col.reshape(HP, 1), (HP, LANE))


def init_params(key):
    """Deterministic Linear-style init (uniform +-1/sqrt(fan_in), (in,out) layout)
    plus precomputed static packing (slab template, (a,b,-log(-a)/2) table)."""
    def linear(k, fan_in, fan_out):
        kw, kb = jax.random.split(k)
        bound = 1.0 / (fan_in ** 0.5)
        w = jax.random.uniform(kw, (fan_in, fan_out), jnp.float32, -bound, bound)
        b = jax.random.uniform(kb, (1, fan_out), jnp.float32, -bound, bound)
        return w, b

    keys = jax.random.split(key, 8)
    p = {}
    p['enc1_w'], p['enc1_b'] = linear(keys[0], 5, H)   # encoder1_1
    p['enc2_w'], p['enc2_b'] = linear(keys[1], H, 1)   # encoder1_2
    p['x1_w'], p['x1_b'] = linear(keys[2], 1, H)       # linear_x_1
    p['x2_w'], p['x2_b'] = linear(keys[3], H, 1)       # linear_x_2
    p['s1_w'], p['s1_b'] = linear(keys[4], 1, H)       # second_1
    p['s2_w'], p['s2_b'] = linear(keys[5], H, 1)       # second_2
    p['n1_w'], p['n1_b'] = linear(keys[6], 1, H)       # nonlear_1
    p['n2_w'], p['n2_b'] = linear(keys[7], H, 1)       # nonlear_2
    p['params1'] = jnp.array([[-1.0, 1.0], [-4.0, 1.0], [-9.0, 1.0]], jnp.float32)
    # NOTE: linear_1/2, linear_u_*, linear_z_*, encoder2_*, linear_Q_* and the
    # sympy-based decoder_1 are unused by forward() and therefore omitted.

    # --- hoisted static packing (was done per forward() call before) ---------
    tmpl = jnp.zeros((SLAB_ROWS, LANE), jnp.float32)
    tmpl = tmpl.at[ROW_WZ:ROW_WZ + HP].set(_col_block(p['enc1_w'][1, :]))
    tmpl = tmpl.at[ROW_WE2:ROW_WE2 + HP].set(_col_block(p['enc2_w'][:, 0]))
    heads = (('x1_w', 'x1_b', 'x2_w'), ('s1_w', 's1_b', 's2_w'),
             ('n1_w', 'n1_b', 'n2_w'))
    for i, (k1, kb, k2) in enumerate(heads):
        tmpl = tmpl.at[ROW_HW1 + i * HP:ROW_HW1 + (i + 1) * HP].set(
            _col_block(p[k1][0, :]))
        tmpl = tmpl.at[ROW_HB1 + i * HP:ROW_HB1 + (i + 1) * HP].set(
            _col_block(p[kb][0, :]))
        tmpl = tmpl.at[ROW_HW2 + i * HP:ROW_HW2 + (i + 1) * HP].set(
            _col_block(p[k2][:, 0]))
    p['slab_template'] = tmpl

    a_all = p['params1'][:, 0]
    b_all = p['params1'][:, 1]
    p['ab_table'] = jnp.stack([a_all, b_all, -jnp.log(-a_all) * 0.5], axis=1)
    p['scal_tail'] = jnp.stack([p['enc2_b'][0, 0], p['x2_b'][0, 0],
                                p['s2_b'][0, 0], p['n2_b'][0, 0]])
    return p


@jax.jit
def linearnet_forward(p, x, u0, zr):
    """x: (1,3) f32, u0: (1,1) class label in {1,2,3}, zr: (n,1) ~ U(-0.5,0.5)."""
    n = zr.shape[0]
    if n > LANE:
        raise ValueError("this single-tile kernel supports n <= 128 samples")

    # Constant part of the encoder pre-activation: explicit broadcast-mul-adds
    # (exact f32, no default-precision matmul -> no bf16 drift under the
    # x20000 norm amplification).
    w = p['enc1_w']
    u0s = u0[0, 0].astype(jnp.float32)
    c = (u0s * w[0, :] + x[0, 0] * w[2, :] + x[0, 1] * w[3, :]
         + x[0, 2] * w[4, :] + p['enc1_b'][0, :])                     # (20,)
    c_blk = jnp.broadcast_to(jnp.pad(c, (0, HP - H)).reshape(HP, 1), (HP, LANE))

    zr_row = jnp.pad(zr.reshape(1, n).astype(jnp.float32),
                     ((0, 0), (0, LANE - n)))

    # Single combined VMEM input: static template + per-call c rows + zr row.
    slab = p['slab_template'].at[ROW_C:ROW_C + HP, :].set(c_blk)
    slab = slab.at[ROW_ZR:ROW_ZR + 1, :].set(zr_row)

    idx = u0[0, 0].astype(jnp.int32) - 1
    abl = p['ab_table'][idx]                                          # (a, b, -log(-a)/2)
    scal = jnp.concatenate([
        x[0], abl, p['scal_tail'],
        jnp.array([1.0 / n, float(n)], jnp.float32)])                 # (12,)

    vm = pl.BlockSpec(memory_space=pltpu.MemorySpace.VMEM)
    sm = pl.BlockSpec(memory_space=pltpu.MemorySpace.SMEM)

    out = pl.pallas_call(
        linearnet_kernel,
        out_shape=jax.ShapeDtypeStruct((2, LANE), jnp.float32),
        in_specs=[vm, sm],
        out_specs=vm,
    )(slab, scal)

    loss = out[1:2, 0:1]                      # (1,1) scalar loss
    ge_z1 = out[0, :n].reshape(n, 1)          # per-iteration encoder1 values
    ge_x = jnp.full((n,), x[0, 0])            # x[0,0] appended each iteration
    ge_z2 = 0
    loss2_sum = 0.0                           # loss2_sum / 100 in the reference
    return loss, ge_z1, ge_x, ge_z2, loss2_sum


def linearnet_reference(p, x, u0, zr):
    """Pure-JAX reference of the same math (for verification)."""
    n = zr.shape[0]
    hp = jax.lax.Precision.HIGHEST
    inp = jnp.concatenate(
        [jnp.full((n, 1), u0[0, 0], jnp.float32), zr,
         jnp.broadcast_to(x, (n, D_X))], axis=1)
    idx = u0[0, 0].astype(jnp.int32) - 1
    a = p['params1'][idx, 0]
    b = p['params1'][idx, 1]
    pre = jnp.dot(inp, p['enc1_w'], precision=hp) + p['enc1_b']
    h = jnp.maximum(pre, 0.0)
    e = jnp.dot(h, p['enc2_w'], precision=hp) + p['enc2_b']
    grad = jnp.sum((pre > 0).astype(jnp.float32)
                   * (p['enc1_w'][1:2, :] * p['enc2_w'].T),
                   axis=1, keepdims=True)

    def mlp(v, w1, b1, w2, b2):
        hid = jnp.maximum(jnp.dot(v, w1, precision=hp) + b1, 0.0)
        return jnp.dot(hid, w2, precision=hp) + b2

    l2a = mlp(e, p['x1_w'], p['x1_b'], p['x2_w'], p['x2_b'])
    l2b = mlp(e, p['s1_w'], p['s1_b'], p['s2_w'], p['s2_b'])
    l2c = mlp(e, p['n1_w'], p['n1_b'], p['n2_w'], p['n2_b'])
    norm = jnp.sqrt((l2a - x[0, 0]) ** 2 + (l2b - x[0, 1]) ** 2
                    + (l2c - x[0, 2]) ** 2)
    loss21 = -(e - b) ** 2 * a - jnp.log(-a) / 2.0 + norm * 20000.0
    loss_i = loss21 + jnp.log(1.0 / jnp.abs(grad))
    return jnp.sum(loss_i) / n, e


if __name__ == "__main__":
    key = jax.random.PRNGKey(0)
    kp, kx, kz = jax.random.split(key, 3)
    params = init_params(kp)

    x = jax.random.normal(kx, (1, D_X), jnp.float32)             # (1, 3)
    u0 = jnp.array([[2.0]], jnp.float32)                         # class label in {1,2,3}
    # TODO(synk): torch.rand inside forward() has no in-kernel equivalent with
    # identical streams; the per-iteration zr draws are generated here instead.
    zr = jax.random.uniform(kz, (N_SAMPLES, 1), jnp.float32, -0.5, 0.5)

    loss, ge_z1, ge_x, ge_z2, loss2 = linearnet_forward(params, x, u0, zr)
    jax.block_until_ready((loss, ge_z1, ge_x))

    ref_loss, ref_e = linearnet_reference(params, x, u0, zr)
    assert jnp.allclose(loss[0, 0], ref_loss, rtol=2e-2, atol=1e-2), (loss, ref_loss)
    assert jnp.allclose(ge_z1, ref_e, rtol=2e-2, atol=1e-3)

    print("KERNEL_OK")
</pallas_src>

<mosaic_0001>
module attributes {stable_mosaic.version = 11 : i64} {
  func.func @linearnet_kernel(%arg0: memref<296x128xf32, #tpu.memory_space<vmem>>, %arg1: memref<12xf32, #tpu.memory_space<smem>>, %arg2: memref<2x128xf32, #tpu.memory_space<vmem>>) attributes {dimension_semantics = [], scalar_prefetch = 0 : i64, scratch_operands = 0 : i64, tpu.core_type = #tpu.core_type<tc>} {
    %c0 = arith.constant 0 : index
    %c0_0 = arith.constant 0 : index
    %0 = vector.load %arg0[%c0, %c0_0] : memref<296x128xf32, #tpu.memory_space<vmem>>, vector<24x128xf32>
    %c24 = arith.constant 24 : index
    %c0_1 = arith.constant 0 : index
    %1 = vector.load %arg0[%c24, %c0_1] : memref<296x128xf32, #tpu.memory_space<vmem>>, vector<24x128xf32>
    %c48 = arith.constant 48 : index
    %c0_2 = arith.constant 0 : index
    %2 = vector.load %arg0[%c48, %c0_2] : memref<296x128xf32, #tpu.memory_space<vmem>>, vector<24x128xf32>
    %c72 = arith.constant 72 : index
    %c0_3 = arith.constant 0 : index
    %3 = vector.load %arg0[%c72, %c0_3] : memref<296x128xf32, #tpu.memory_space<vmem>>, vector<72x128xf32>
    %c144 = arith.constant 144 : index
    %c0_4 = arith.constant 0 : index
    %4 = vector.load %arg0[%c144, %c0_4] : memref<296x128xf32, #tpu.memory_space<vmem>>, vector<72x128xf32>
    %c216 = arith.constant 216 : index
    %c0_5 = arith.constant 0 : index
    %5 = vector.load %arg0[%c216, %c0_5] : memref<296x128xf32, #tpu.memory_space<vmem>>, vector<72x128xf32>
    %c288 = arith.constant 288 : index
    %c0_6 = arith.constant 0 : index
    %6 = vector.load %arg0[%c288, %c0_6] : memref<296x128xf32, #tpu.memory_space<vmem>>, vector<1x128xf32>
    %c0_7 = arith.constant 0 : index
    %7 = memref.load %arg1[%c0_7] : memref<12xf32, #tpu.memory_space<smem>>
    %c1 = arith.constant 1 : index
    %8 = memref.load %arg1[%c1] : memref<12xf32, #tpu.memory_space<smem>>
    %c2 = arith.constant 2 : index
    %9 = memref.load %arg1[%c2] : memref<12xf32, #tpu.memory_space<smem>>
    %c3 = arith.constant 3 : index
    %10 = memref.load %arg1[%c3] : memref<12xf32, #tpu.memory_space<smem>>
    %c4 = arith.constant 4 : index
    %11 = memref.load %arg1[%c4] : memref<12xf32, #tpu.memory_space<smem>>
    %c5 = arith.constant 5 : index
    %12 = memref.load %arg1[%c5] : memref<12xf32, #tpu.memory_space<smem>>
    %c6 = arith.constant 6 : index
    %13 = memref.load %arg1[%c6] : memref<12xf32, #tpu.memory_space<smem>>
    %c7 = arith.constant 7 : index
    %14 = memref.load %arg1[%c7] : memref<12xf32, #tpu.memory_space<smem>>
    %c8 = arith.constant 8 : index
    %15 = memref.load %arg1[%c8] : memref<12xf32, #tpu.memory_space<smem>>
    %c9 = arith.constant 9 : index
    %16 = memref.load %arg1[%c9] : memref<12xf32, #tpu.memory_space<smem>>
    %c10 = arith.constant 10 : index
    %17 = memref.load %arg1[%c10] : memref<12xf32, #tpu.memory_space<smem>>
    %c11 = arith.constant 11 : index
    %18 = memref.load %arg1[%c11] : memref<12xf32, #tpu.memory_space<smem>>
    %19 = vector.shape_cast %6 : vector<1x128xf32> to vector<1x128xf32>
    %20 = vector.broadcast %19 : vector<1x128xf32> to vector<24x128xf32>
    %21 = arith.mulf %0, %20 : vector<24x128xf32>
    %22 = arith.addf %21, %1 : vector<24x128xf32>
    %cst = arith.constant 0.000000e+00 : f32
    %23 = vector.broadcast %cst : f32 to vector<24x128xf32>
    %24 = arith.maximumf %22, %23 : vector<24x128xf32>
    %25 = arith.mulf %24, %2 : vector<24x128xf32>
    %cst_8 = arith.constant dense<0.000000e+00> : vector<128xf32>
    %26 = vector.multi_reduction <add>, %25, %cst_8 [0] : vector<24x128xf32> to vector<128xf32>
    %27 = vector.shape_cast %26 : vector<128xf32> to vector<1x128xf32>
    %28 = vector.broadcast %13 : f32 to vector<1x128xf32>
    %29 = arith.addf %27, %28 : vector<1x128xf32>
    %cst_9 = arith.constant 0.000000e+00 : f32
    %30 = vector.broadcast %cst_9 : f32 to vector<24x128xf32>
    %31 = arith.cmpf ogt, %22, %30 : vector<24x128xf32>
    %32 = arith.mulf %0, %2 : vector<24x128xf32>
    %cst_10 = arith.constant 0.000000e+00 : f32
    %33 = vector.broadcast %cst_10 : f32 to vector<24x128xf32>
    %34 = arith.select %31, %32, %33 : vector<24x128xi1>, vector<24x128xf32>
    %cst_11 = arith.constant dense<0.000000e+00> : vector<128xf32>
    %35 = vector.multi_reduction <add>, %34, %cst_11 [0] : vector<24x128xf32> to vector<128xf32>
    %36 = vector.shape_cast %35 : vector<128xf32> to vector<1x128xf32>
    %37 = vector.shape_cast %29 : vector<1x128xf32> to vector<1x128xf32>
    %38 = vector.broadcast %37 : vector<1x128xf32> to vector<72x128xf32>
    %39 = arith.mulf %3, %38 : vector<72x128xf32>
    %40 = arith.addf %39, %4 : vector<72x128xf32>
    %cst_12 = arith.constant 0.000000e+00 : f32
    %41 = vector.broadcast %cst_12 : f32 to vector<72x128xf32>
    %42 = arith.maximumf %40, %41 : vector<72x128xf32>
    %43 = arith.mulf %42, %5 : vector<72x128xf32>
    %44 = vector.extract_strided_slice %43 {offsets = [0, 0], sizes = [24, 128], strides = [1, 1]} : vector<72x128xf32> to vector<24x128xf32>
    %cst_13 = arith.constant dense<0.000000e+00> : vector<128xf32>
    %45 = vector.multi_reduction <add>, %44, %cst_13 [0] : vector<24x128xf32> to vector<128xf32>
    %46 = vector.shape_cast %45 : vector<128xf32> to vector<1x128xf32>
    %47 = vector.broadcast %14 : f32 to vector<1x128xf32>
    %48 = arith.addf %46, %47 : vector<1x128xf32>
    %49 = vector.extract_strided_slice %43 {offsets = [24, 0], sizes = [24, 128], strides = [1, 1]} : vector<72x128xf32> to vector<24x128xf32>
    %cst_14 = arith.constant dense<0.000000e+00> : vector<128xf32>
    %50 = vector.multi_reduction <add>, %49, %cst_14 [0] : vector<24x128xf32> to vector<128xf32>
    %51 = vector.shape_cast %50 : vector<128xf32> to vector<1x128xf32>
    %52 = vector.broadcast %15 : f32 to vector<1x128xf32>
    %53 = arith.addf %51, %52 : vector<1x128xf32>
    %54 = vector.extract_strided_slice %43 {offsets = [48, 0], sizes = [24, 128], strides = [1, 1]} : vector<72x128xf32> to vector<24x128xf32>
    %cst_15 = arith.constant dense<0.000000e+00> : vector<128xf32>
    %55 = vector.multi_reduction <add>, %54, %cst_15 [0] : vector<24x128xf32> to vector<128xf32>
    %56 = vector.shape_cast %55 : vector<128xf32> to vector<1x128xf32>
    %57 = vector.broadcast %16 : f32 to vector<1x128xf32>
    %58 = arith.addf %56, %57 : vector<1x128xf32>
    %59 = vector.broadcast %7 : f32 to vector<1x128xf32>
    %60 = arith.subf %48, %59 : vector<1x128xf32>
    %61 = arith.mulf %60, %60 : vector<1x128xf32>
    %62 = vector.broadcast %8 : f32 to vector<1x128xf32>
    %63 = arith.subf %53, %62 : vector<1x128xf32>
    %64 = arith.mulf %63, %63 : vector<1x128xf32>
    %65 = arith.addf %61, %64 : vector<1x128xf32>
    %66 = vector.broadcast %9 : f32 to vector<1x128xf32>
    %67 = arith.subf %58, %66 : vector<1x128xf32>
    %68 = arith.mulf %67, %67 : vector<1x128xf32>
    %69 = arith.addf %65, %68 : vector<1x128xf32>
    %70 = math.sqrt %69 : vector<1x128xf32>
    %71 = vector.broadcast %11 : f32 to vector<1x128xf32>
    %72 = arith.subf %29, %71 : vector<1x128xf32>
    %73 = arith.mulf %72, %72 : vector<1x128xf32>
    %cst_16 = arith.constant 0.000000e+00 : f32
    %74 = vector.broadcast %cst_16 : f32 to vector<1x128xf32>
    %75 = arith.subf %74, %73 : vector<1x128xf32>
    %76 = vector.broadcast %10 : f32 to vector<1x128xf32>
    %77 = arith.mulf %75, %76 : vector<1x128xf32>
    %78 = vector.broadcast %12 : f32 to vector<1x128xf32>
    %79 = arith.addf %77, %78 : vector<1x128xf32>
    %cst_17 = arith.constant 2.000000e+04 : f32
    %80 = vector.broadcast %cst_17 : f32 to vector<1x128xf32>
    %81 = arith.mulf %70, %80 : vector<1x128xf32>
    %82 = arith.addf %79, %81 : vector<1x128xf32>
    %83 = math.absf %36 : vector<1x128xf32>
    %84 = math.log %83 : vector<1x128xf32>
    %85 = arith.subf %82, %84 : vector<1x128xf32>
    %86 = tpu.iota {dimensions = array<i32: 1>} : vector<1x128xi32>
    %87 = arith.sitofp %86 : vector<1x128xi32> to vector<1x128xf32>
    %88 = vector.broadcast %18 : f32 to vector<1x128xf32>
    %89 = arith.cmpf olt, %87, %88 : vector<1x128xf32>
    %cst_18 = arith.constant 0.000000e+00 : f32
    %90 = vector.broadcast %cst_18 : f32 to vector<1x128xf32>
    %91 = arith.select %89, %85, %90 : vector<1x128xi1>, vector<1x128xf32>
    %92 = vector.shape_cast %91 : vector<1x128xf32> to vector<1x1x128xf32>
    %cst_19 = arith.constant dense<0.000000e+00> : vector<1xf32>
    %93 = vector.multi_reduction <add>, %92, %cst_19 [1, 2] : vector<1x1x128xf32> to vector<1xf32>
    %94 = vector.shape_cast %93 : vector<1xf32> to vector<1x1x1xf32>
    %95 = vector.extract %94[0, 0, 0] : f32 from vector<1x1x1xf32>
    %96 = arith.mulf %95, %17 : f32
    %c0_20 = arith.constant 0 : index
    %c0_21 = arith.constant 0 : index
    %97 = vector.load %arg2[%c0_20, %c0_21] : memref<2x128xf32, #tpu.memory_space<vmem>>, vector<1x128xf32>
    tpu.vector_store %arg2[%c0_20, %c0_21], %29 {strides = array<i32>} : memref<2x128xf32, #tpu.memory_space<vmem>>, vector<1x128xf32>,
    %98 = vector.broadcast %96 : f32 to vector<1x128xf32>
    %c1_22 = arith.constant 1 : index
    %c0_23 = arith.constant 0 : index
    %99 = vector.load %arg2[%c1_22, %c0_23] : memref<2x128xf32, #tpu.memory_space<vmem>>, vector<1x128xf32>
    tpu.vector_store %arg2[%c1_22, %c0_23], %98 {strides = array<i32>} : memref<2x128xf32, #tpu.memory_space<vmem>>, vector<1x128xf32>,
    return
  }
}

</mosaic_0001>

<bundles_post_ra>
// kernel: linearnet_forward.1
= control target key start
LH: loop header
LB: loop body
LE: loop exit
PB: predicated region body
PF: predicated region fallthrough
CT: control target
= control target key end

     0   :  { %7 = vsyncpa [#allocation3], 0  ;;  %s275_s12 = smov [#allocation2]   ;;  %s434_s0 = inlined_call_operand.vmem [shape: f32[296,128], index: 0, kind: input, shape index: {}]   ;;  %s435_s1 = inlined_call_operand.vmem [shape: f32[12], index: 1, kind: input, shape index: {}]   ;;  %s436_s2 = inlined_call_operand.vmem [shape: f32[2,128], index: 2, kind: output, shape index: {}]  }
   0x1   :  { %s15_s11 = sshll.u32 %s435_s1, 4  ;;  %s16_s11 = int_to_ptr.vmem [resolvable:$true] %s15_s11 }
   0x2   :  { %18 = dma.vmem_to_smem %s16_s11, 16, %s275_s12, [#allocation3]  }
   0x3   :  { %273 = dma.done.wait [#allocation3], 16  }
   0x4   :  { %274 = vsyncadd [#allocation3], 4294967280 }
   0x5   :  { %23 = sfence }
   0x6   :  { %v24_v0 = vld [vmem:[%s434_s0] sm:$0xff]  ;;  %v25_v1 = vld [vmem:[%s434_s0 + $0x8] sm:$0xff]  ;;  %v26_v2 = vld [vmem:[%s434_s0 + $0x10] sm:$0xff]  ;;  %s247_s4 = sld [smem:[#allocation2 + $0x6]]  ;;  %vm222_vm6 = vcmask 1040384  }
   0x7   :  { %v256_v3 = vld [vmem:[%s434_s0 + $0x120] ss:$0 sm:$0xff]  ;;  %v27_v4 = vld [vmem:[%s434_s0 + $0x18] sm:$0xff]  ;;  %v29_v6 = vld [vmem:[%s434_s0 + $0x28] sm:$0xff]  ;;  %s426_s3 = sld [smem:[#allocation2 + $0x7]] }
   0x8   :  { %v28_v5 = vld [vmem:[%s434_s0 + $0x20] sm:$0xff]  ;;  %v74_v7 = vmul.f32 %v256_v3, %v24_v0  ;;  %v75_v8 = vmul.f32 %v256_v3, %v25_v1  ;;  %v76_v9 = vmul.f32 %v256_v3, %v26_v2  ;;  %v30_v13 = vld [vmem:[%s434_s0 + $0x30] sm:$0xff]  ;;  %v31_v14 = vld [vmem:[%s434_s0 + $0x38] sm:$0xff]  ;;  %s250_s5 = sld [smem:[#allocation2 + $0x9]] }
   0x9   :  { %v32_v15 = vld [vmem:[%s434_s0 + $0x40] sm:$0xff]  ;;  %v33_v29 = vld [vmem:[%s434_s0 + $0x48] sm:$0xff]  ;;  %v99_v31 = vmul.f32 %v30_v13, %v24_v0  ;;  %v100_v32 = vmul.f32 %v31_v14, %v25_v1  ;;  %v34_v33 = vld [vmem:[%s434_s0 + $0x50] sm:$0xff]  ;;  %s242_s6 = sld [smem:[#allocation2 + $0x1]] }
   0xa   :  { %v77_v10 = vadd.f32 %v74_v7, %v27_v4  ;;  %v78_v11 = vadd.f32 %v75_v8, %v28_v5  ;;  %v315_v12 = vadd.f32 %v76_v9, %v29_v6  ;;  %v35_v34 = vld [vmem:[%s434_s0 + $0x58] sm:$0xff]  ;;  %v36_v35 = vld [vmem:[%s434_s0 + $0x60] sm:$0xff]  ;;  %v37_v37 = vld [vmem:[%s434_s0 + $0x68] sm:$0xff]  ;;  %v101_v47 = vmul.f32 %v32_v15, %v26_v2  ;;  %s243_s7 = sld [smem:[#allocation2 + $0x2]] }
   0xb   :  { %v38_v38 = vld [vmem:[%s434_s0 + $0x70] sm:$0xff]  ;;  %v39_v39 = vld [vmem:[%s434_s0 + $0x78] sm:$0xff]  ;;  %v40_v40 = vld [vmem:[%s434_s0 + $0x80] sm:$0xff]  ;;  %s245_s8 = sld [smem:[#allocation2 + $0x4]] }
   0xc   :  { %v80_v16 = vmax.f32 %v77_v10, 0.0  ;;  %v81_v17 = vmax.f32 %v78_v11, 0.0  ;;  %v82_v18 = vmax.f32 %v315_v12, 0.0  ;;  %v94_v30 = vstv %s247_s4  ;;  %v41_v41 = vld [vmem:[%s434_s0 + $0x88] sm:$0xff]  ;;  %v42_v42 = vld [vmem:[%s434_s0 + $0x90] sm:$0xff]  ;;  %v43_v44 = vld [vmem:[%s434_s0 + $0x98] sm:$0xff] }
   0xd   :  { %vm96_vm0 = vcmp.gt.f32.partialorder %v77_v10, 0.0  ;;  %vm97_vm1 = vcmp.gt.f32.partialorder %v78_v11, 0.0  ;;  %v44_v45 = vld [vmem:[%s434_s0 + $0xa0] sm:$0xff]  ;;  %v45_v46 = vld [vmem:[%s434_s0 + $0xa8] sm:$0xff]  ;;  %v46_v50 = vld [vmem:[%s434_s0 + $0xb0] sm:$0xff]  ;;  %vm98_vm2 = vcmp.gt.f32.partialorder %v315_v12, 0.0 }
   0xe   :  { %v83_v19 = vmul.f32 %v80_v16, %v30_v13  ;;  %v84_v20 = vmul.f32 %v81_v17, %v31_v14  ;;  %v85_v21 = vmul.f32 %v82_v18, %v32_v15  ;;  %v102_v48 = vsel %vm96_vm0, %v99_v31, 0.0  ;;  %v47_v51 = vld [vmem:[%s434_s0 + $0xb8] sm:$0xff]  ;;  %v48_v52 = vld [vmem:[%s434_s0 + $0xc0] sm:$0xff]  ;;  %v49_v57 = vld [vmem:[%s434_s0 + $0xc8] sm:$0xff]  ;;  %s249_s4 = sld [smem:[#allocation2 + $0x8]] }
   0xf   :  { %v103_v49 = vsel %vm97_vm1, %v100_v32, 0.0  ;;  %v50_v58 = vld [vmem:[%s434_s0 + $0xd0] sm:$0xff]  ;;  %v51_v63 = vld [vmem:[%s434_s0 + $0xd8] sm:$0xff]  ;;  %v52_v4 = vld [vmem:[%s434_s0 + $0xe0] sm:$0xff]  ;;  %s244_s9 = sld [smem:[#allocation2 + $0x3]] }
  0x10   :  { %v86_v22 = vadd.f32 %v84_v20, %v83_v19  ;;  %v53_v5 = vld [vmem:[%s434_s0 + $0xe8] sm:$0xff]  ;;  %v54_v6 = vld [vmem:[%s434_s0 + $0xf0] sm:$0xff]  ;;  %v55_v11 = vld [vmem:[%s434_s0 + $0xf8] sm:$0xff]  ;;  %s246_s10 = sld [smem:[#allocation2 + $0x5]] }
  0x11   :  { %v56_v13 = vld [vmem:[%s434_s0 + $0x100] sm:$0xff]  ;;  %v57_v14 = vld [vmem:[%s434_s0 + $0x108] sm:$0xff]  ;;  %v58_v19 = vld [vmem:[%s434_s0 + $0x110] sm:$0xff]  ;;  %s252_s11 = sld [smem:[#allocation2 + $0xb]] }
  0x12   :  { %v87_v23 = vadd.f32 %v86_v22, %v85_v21  ;;  %v59_v20 = vld [vmem:[%s434_s0 + $0x118] sm:$0xff]  ;;  %s424_s0 = sld [smem:[#allocation2]] }
  0x13   :  { %s251_s12 = sld [smem:[#allocation2 + $0xa]] }
  0x14   :  { %v88_v24 = vrot.slane %v87_v23, 4 }
  0x16   :  { %v89_v25 = vadd.f32 %v88_v24, %v87_v23 }
  0x18   :  { %v90_v26 = vrot.slane %v89_v25, 2 }
  0x1a   :  { %v91_v27 = vadd.f32 %v90_v26, %v89_v25 }
  0x1c   :  { %v92_v28 = vrot.slane %v91_v27, 1 }
  0x1e   :  { %v93_v36 = vadd.f32 %v92_v28, %v91_v27 }
  0x20   :  { %v357_v43 = vadd.f32 %v94_v30, %v93_v36 }
  0x22   :  { %v113_v53 = vmul.f32 %v357_v43, %v33_v29  ;;  %v114_v54 = vmul.f32 %v357_v43, %v34_v33  ;;  %v115_v55 = vmul.f32 %v357_v43, %v35_v34  ;;  %v116_v56 = vmul.f32 %v357_v43, %v36_v35  ;;  %234 = vst [vmem:[%s436_s2] sm:$0x1] %v357_v43 }
  0x23   :  { %v117_v59 = vmul.f32 %v357_v43, %v37_v37  ;;  %v118_v60 = vmul.f32 %v357_v43, %v38_v38  ;;  %v119_v61 = vmul.f32 %v357_v43, %v39_v39  ;;  %v120_v62 = vmul.f32 %v357_v43, %v40_v40 }
  0x24   :  { %v121_v0 = vmul.f32 %v357_v43, %v41_v41  ;;  %v122_v1 = vadd.f32 %v113_v53, %v42_v42  ;;  %v123_v2 = vadd.f32 %v114_v54, %v43_v44  ;;  %v124_v3 = vadd.f32 %v115_v55, %v44_v45 }
  0x25   :  { %v125_v7 = vadd.f32 %v116_v56, %v45_v46  ;;  %v126_v8 = vadd.f32 %v117_v59, %v46_v50  ;;  %v127_v9 = vadd.f32 %v118_v60, %v47_v51  ;;  %v128_v10 = vadd.f32 %v119_v61, %v48_v52 }
  0x26   :  { %v129_v15 = vadd.f32 %v120_v62, %v49_v57  ;;  %v130_v16 = vadd.f32 %v121_v0, %v50_v58  ;;  %v131_v17 = vmax.f32 %v122_v1, 0.0  ;;  %v132_v18 = vmax.f32 %v123_v2, 0.0 }
  0x27   :  { %v133_v21 = vmax.f32 %v124_v3, 0.0  ;;  %v134_v22 = vmax.f32 %v125_v7, 0.0  ;;  %v135_v23 = vmax.f32 %v126_v8, 0.0  ;;  %v136_v24 = vmax.f32 %v127_v9, 0.0 }
  0x28   :  { %v137_v25 = vmax.f32 %v128_v10, 0.0  ;;  %v138_v26 = vmax.f32 %v129_v15, 0.0  ;;  %v139_v27 = vmax.f32 %v130_v16, 0.0  ;;  %v140_v28 = vmul.f32 %v131_v17, %v51_v63 }
  0x29   :  { %v141_v29 = vmul.f32 %v132_v18, %v52_v4  ;;  %v142_v30 = vmul.f32 %v133_v21, %v53_v5  ;;  %v143_v31 = vmul.f32 %v134_v22, %v54_v6  ;;  %v144_v32 = vmul.f32 %v135_v23, %v55_v11 }
  0x2a   :  { %v145_v33 = vmul.f32 %v136_v24, %v56_v13  ;;  %v146_v34 = vmul.f32 %v137_v25, %v57_v14  ;;  %v147_v35 = vmul.f32 %v138_v26, %v58_v19  ;;  %v148_v36 = vmul.f32 %v139_v27, %v59_v20 }
  0x2b   :  { %v149_v37 = vadd.f32 %v141_v29, %v140_v28  ;;  %v159_v38 = vadd.f32 %v144_v32, %v143_v31  ;;  %v105_v40 = vadd.f32 %v103_v49, %v102_v48  ;;  %v104_v44 = vsel %vm98_vm2, %v101_v47, 0.0 }
  0x2c   :  { %v169_v39 = vadd.f32 %v147_v35, %v146_v34  ;;  %v157_v61 = vstv %s426_s3  ;;  %v167_v62 = vstv %s249_s4  ;;  %v177_v3 = vstv %s250_s5 }
  0x2d   :  { %v150_v41 = vadd.f32 %v149_v37, %v142_v30  ;;  %v160_v42 = vadd.f32 %v159_v38, %v145_v33  ;;  %v106_v52 = vadd.f32 %v105_v40, %v104_v44  ;;  %v179_v5 = vstv %s424_s0 }
  0x2e   :  { %v170_v45 = vadd.f32 %v169_v39, %v148_v36  ;;  %v182_v6 = vstv %s242_s6  ;;  %v186_v9 = vstv %s243_s7  ;;  %v202_v23 = vstv %s245_s8 }
  0x2f   :  { %v151_v46 = vrot.slane %v150_v41, 4  ;;  %v161_v50 = vrot.slane %v160_v42, 4  ;;  %v107_v47 = vrot.slane %v106_v52, 4  ;;  %v203_v24 = vsub.f32 %v357_v43, %v202_v23 }
  0x30   :  { %v171_v51 = vrot.slane %v170_v45, 4  ;;  %v206_v33 = vstv %s244_s9  ;;  %v216_v34 = vlaneseq  ;;  %v208_v43 = vstv %s246_s10 }
  0x31   :  { %v152_v12 = vadd.f32 %v151_v46, %v150_v41  ;;  %v162_v53 = vadd.f32 %v161_v50, %v160_v42  ;;  %v108_v0 = vadd.f32 %v107_v47, %v106_v52  ;;  %v204_v28 = vmul.f32 %v203_v24, %v203_v24 }
  0x32   :  { %v172_v54 = vadd.f32 %v171_v51, %v170_v45  ;;  %v217_v39 = vand.u32 127, %v216_v34  ;;  %v219_v52 = vstv %s252_s11 }
  0x33   :  { %v153_v48 = vrot.slane %v152_v12, 2  ;;  %v163_v49 = vrot.slane %v162_v53, 2  ;;  %v109_v11 = vrot.slane %v108_v0, 2  ;;  %v205_v32 = vsub.f32 0.0, %v204_v28 }
  0x34   :  { %v173_v55 = vrot.slane %v172_v54, 2  ;;  %v218_v46 = vcvt.s32.f32 %v217_v39 }
  0x35   :  { %v154_v56 = vadd.f32 %v153_v48, %v152_v12  ;;  %v164_v57 = vadd.f32 %v163_v49, %v162_v53  ;;  %v110_v19 = vadd.f32 %v109_v11, %v108_v0  ;;  %v207_v37 = vmul.f32 %v206_v33, %v205_v32 }
  0x36   :  { %v174_v58 = vadd.f32 %v173_v55, %v172_v54  ;;  %vm220_vm5 = vcmp.lt.f32.partialorder %v218_v46, %v219_v52 }
  0x37   :  { %v155_v59 = vrot.slane %v154_v56, 1  ;;  %v165_v60 = vrot.slane %v164_v57, 1  ;;  %v111_v22 = vrot.slane %v110_v19, 1  ;;  %v209_v44 = vadd.f32 %v208_v43, %v207_v37 }
  0x38   :  { %v175_v63 = vrot.slane %v174_v58, 1 }
  0x39   :  { %v156_v1 = vadd.f32 %v155_v59, %v154_v56  ;;  %v166_v2 = vadd.f32 %v165_v60, %v164_v57  ;;  %v112_v25 = vadd.f32 %v111_v22, %v110_v19 }
  0x3a   :  { %v176_v4 = vadd.f32 %v175_v63, %v174_v58 }
  0x3b   :  { %v158_v7 = vadd.f32 %v157_v61, %v156_v1  ;;  %v168_v8 = vadd.f32 %v167_v62, %v166_v2  ;;  %v212_v29 = vand.u32 2147483647, %v112_v25 }
  0x3c   :  { %v178_v10 = vadd.f32 %v177_v3, %v176_v4 }
  0x3d   :  { %v180_v13 = vsub.f32 %v158_v7, %v179_v5  ;;  %v183_v14 = vsub.f32 %v168_v8, %v182_v6 }
  0x3e   :  { %v187_v15 = vsub.f32 %v178_v10, %v186_v9 }
  0x3f   :  { %v181_v16 = vmul.f32 %v180_v13, %v180_v13  ;;  %v184_v17 = vmul.f32 %v183_v14, %v183_v14 }
  0x40   :  { %v188_v18 = vmul.f32 %v187_v15, %v187_v15 }
  0x41   :  { %v185_v20 = vadd.f32 %v184_v17, %v181_v16 }
  0x43   :  { %v189_v21 = vadd.f32 %v188_v18, %v185_v20 }
  0x45   :  { %257 = vrsqrt.f32 %v189_v21  ;;  %vm197_vm3 = vcmp.eq.f32.partialorder %v189_v21, inf  ;;  %v200_v38 = vand.u32 2147483648, %v189_v21  ;;  %vm199_vm4 = vcmp.eq.f32.partialorder %v189_v21, 0.0 }
  0x46   :  { %259 = vlog2.f32 %v212_v29 }
  0x4b   :  { %v258_v26 = vpop.eup %257 }
  0x4c   :  { %v191_v27 = vmul.f32 %v258_v26, %v189_v21  ;;  %v260_v41 = vpop.eup %259 }
  0x4d   :  { %v214_v51 = vmul.f32 0.6931472, %v260_v41 }
  0x4e   :  { %v192_v30 = vmul.f32 %v258_v26, %v191_v27 }
  0x50   :  { %v193_v31 = vmul.f32 0.5, %v192_v30 }
  0x52   :  { %v194_v35 = vsub.f32 1.5, %v193_v31 }
  0x54   :  { %v195_v36 = vmul.f32 %v258_v26, %v194_v35 }
  0x56   :  { %v196_v40 = vmul.f32 %v195_v36, %v189_v21 }
  0x58   :  { %v198_v42 = vsel %vm197_vm3, %v189_v21, %v196_v40 }
  0x59   :  { %v201_v45 = vsel %vm199_vm4, %v200_v38, %v198_v42 }
  0x5a   :  { %v210_v50 = vmul.f32 20000.0, %v201_v45 }
  0x5c   :  { %v211_v12 = vadd.f32 %v210_v50, %v209_v44 }
  0x5e   :  { %v215_v53 = vsub.f32 %v211_v12, %v214_v51 }
  0x60   :  { %v221_v54 = vsel %vm220_vm5, %v215_v53, 0.0 }
  0x61   :  { %v223_v48 = vsel %vm222_vm6, %v221_v54, 0.0 }
  0x62   :  { %224 = vadd.xlane.f32.xlu0 %v223_v48 }
  0xd5   :  { %v225_v49 = vpop.xlane.xlu0 %224 }
  0xd6   :  { %v226_v55 = vrot.slane %v225_v49, 4 }
  0xd8   :  { %v227_v47 = vadd.f32 %v226_v55, %v225_v49 }
  0xda   :  { %v228_v56 = vrot.slane %v227_v47, 2 }
  0xdc   :  { %v229_v57 = vadd.f32 %v228_v56, %v227_v47 }
  0xde   :  { %v230_v58 = vrot.slane %v229_v57, 1 }
  0xe0   :  { %v231_v59 = vadd.f32 %v230_v58, %v229_v57 }
  0xe2   :  { %253 = vpush %v231_v59 }
 0x113   :  { %s254_s13 = spop %253 }
 0x114   :  { %s233_s14 = smul.f32 %s254_s13, %s251_s12 }
 0x116   :  { %v235_v60 = vstv %s233_s14 }
 0x117   :  { %236 = vst [vmem:[%s436_s2 + $0x1] sm:$0x1] %v235_v60 }
 0x118   :  { %241 = vsyncpa [#allocation3], 1 }

</bundles_post_ra>
